<compile_context>
chip_gen: v6e
topology: v6e:2x2x1
jax: 0.10.0
libtpu: 0.0.40
codegen_flags: <defaults>
</compile_context>

<pallas_src>
import functools
import math

import jax
import jax.numpy as jnp
from jax.experimental import pallas as pl
from jax.experimental.pallas import tpu as pltpu

_NEG_BIG = -3e38  # finite stand-in for -inf when masking invalid lanes (avoids inf-inf = NaN)


def _round_up(x, m):
    return (x + m - 1) // m * m


def _cdiv(a, b):
    return (a + b - 1) // b


def _smoothing_constants(size, smoothing):
    confidence = 1.0 - smoothing
    smooth_val = smoothing / (size - 2)
    c_conf = confidence * math.log(confidence) if confidence > 0.0 else 0.0
    c_smooth = smooth_val * math.log(smooth_val) if smooth_val > 0.0 else 0.0
    row_const_c = c_conf + (size - 2) * c_smooth   # per non-pad row constant sum td*log(td)
    return confidence, smooth_val, row_const_c


def _choose_tiles(N, V, tile_n, tile_v, dtype):
    # Lane-dense vocab tiles (multiple of 128); row tiles aligned to the dtype's sublane tiling.
    row_align = 8 if jnp.dtype(dtype).itemsize >= 4 else 16
    tile_v = _round_up(max(128, min(tile_v, _round_up(V, 128))), 128)
    tile_n = _round_up(max(row_align, min(tile_n, _round_up(N, row_align))), row_align)
    # Prefer >= 2 row tiles so the "parallel" axis can shard across TensorCores (v7x megacore).
    if _cdiv(N, tile_n) < 2 and N > row_align:
        tile_n = _round_up(_cdiv(N, 2), row_align)
    return tile_n, tile_v


def _vmem_limit(block_bytes):
    # 2x-buffered x block + small scratch/output slabs, with headroom; keep within what every
    # generation can grant (v5e/v6e: 128 MiB physical, v7x: 64 MiB per TensorCore).
    need = 2 * block_bytes + 4 * 1024 * 1024
    return int(min(max(2 * need, 32 * 1024 * 1024), 56 * 1024 * 1024))


def _tree_add_slabs(terms):
    """Sum lane-aligned 128-wide column slices of (TN, TV) into one (TN, 128) slab."""
    tv = terms.shape[1]
    slabs = [terms[:, k * 128:(k + 1) * 128] for k in range(tv // 128)]
    while len(slabs) > 1:
        nxt = [slabs[i] + slabs[i + 1] for i in range(0, len(slabs) - 1, 2)]
        if len(slabs) % 2:
            nxt.append(slabs[-1])
        slabs = nxt
    return slabs[0]


# ----------------------------------------------------------------------------------------------
# Kernel 1: module-exact semantics — x is already log-probabilities.
#   loss_row = C - sum_j w_j * x_j   (C added host-side),  w in {confidence, smooth_val, 0}
# ----------------------------------------------------------------------------------------------
def _ls_logprob_kernel(x_ref, tgt_ref, out_ref, acc_ref, *,
                       n_rows, n_cols, padding_idx, neg_conf, neg_smooth, smooth_is_zero):
    ni = pl.program_id(0)
    vi = pl.program_id(1)
    nv = pl.num_programs(1)

    @pl.when(vi == 0)
    def _():
        acc_ref[...] = jnp.zeros_like(acc_ref)

    x = x_ref[...].astype(jnp.float32)          # (TN, TV) log-probs (f32 accumulation)
    tn, tv = x.shape
    tgt = tgt_ref[...]                          # (TN, 1) int32, resident across the V axis

    v_off = vi * tv
    tgt_local = tgt - v_off                     # tile-local target column (per-row)
    pad_local = padding_idx - v_off             # per-step scalar
    cols_left = n_cols - v_off                  # per-step scalar (ragged V edge)

    local_col = jax.lax.broadcasted_iota(jnp.int32, (tn, tv), 1)
    row_id = jax.lax.broadcasted_iota(jnp.int32, (tn, 1), 0) + ni * tn
    row_ok = jnp.logical_and(row_id < n_rows, tgt != padding_idx)     # (TN, 1)

    is_tgt = local_col == tgt_local
    keep = jnp.logical_and(row_ok, local_col < cols_left)
    keep = jnp.logical_and(keep, local_col != pad_local)              # select, not w=0 (NaN-safe)
    if smooth_is_zero:
        keep = jnp.logical_and(keep, is_tgt)

    negw = jnp.where(is_tgt, jnp.float32(neg_conf), jnp.float32(neg_smooth))
    terms = jnp.where(keep, x * negw, jnp.float32(0.0))               # (TN, TV)

    acc_ref[...] += _tree_add_slabs(terms)                            # (TN, 128) accumulator

    @pl.when(vi == nv - 1)
    def _():
        out_ref[...] = acc_ref[...]             # lane-dense; host-side jnp.sum over all lanes


def label_smoothing_loss(x, target, *, size, padding_idx, smoothing,
                         tile_n=256, tile_v=4096):
    """x: (N, size) log-probs (f32 or bf16); target: (N,) int. Returns the scalar sum-KL loss."""
    assert size > 2, "label smoothing requires size > 2 (divides by size - 2)"
    N, V = x.shape
    assert V == size

    confidence, smooth_val, row_const_c = _smoothing_constants(size, smoothing)
    tgt = target.reshape(N, 1).astype(jnp.int32)

    tile_n, tile_v = _choose_tiles(N, V, tile_n, tile_v, x.dtype)
    grid = (_cdiv(N, tile_n), _cdiv(V, tile_v))
    Np = grid[0] * tile_n

    kernel = functools.partial(
        _ls_logprob_kernel,
        n_rows=N, n_cols=V, padding_idx=padding_idx,
        neg_conf=-confidence, neg_smooth=-smooth_val,
        smooth_is_zero=(smooth_val == 0.0))

    itemsize = jnp.dtype(x.dtype).itemsize
    partials = pl.pallas_call(
        kernel,
        out_shape=jax.ShapeDtypeStruct((Np, 128), jnp.float32),
        grid_spec=pltpu.PrefetchScalarGridSpec(
            num_scalar_prefetch=0,
            grid=grid,
            in_specs=[
                pl.BlockSpec((tile_n, tile_v), lambda i, j: (i, j)),
                pl.BlockSpec((tile_n, 1), lambda i, j: (i, 0)),      # target resident across V
            ],
            out_specs=pl.BlockSpec((tile_n, 128), lambda i, j: (i, 0)),
            scratch_shapes=[pltpu.VMEM((tile_n, 128), jnp.float32)],
        ),
        compiler_params=pltpu.CompilerParams(
            dimension_semantics=("parallel", "arbitrary"),
            vmem_limit_bytes=_vmem_limit(tile_n * tile_v * itemsize)),
        cost_estimate=pl.CostEstimate(
            flops=8 * N * V, transcendentals=0,
            bytes_accessed=N * V * itemsize + N * 4 + Np * 128 * 4),
    )(x, tgt)

    nonpad = jnp.sum((target != padding_idx).astype(jnp.float32))
    return jnp.sum(partials) + jnp.float32(row_const_c) * nonpad


# ----------------------------------------------------------------------------------------------
# Kernel 2 (fused pipeline): consume raw logits; log_softmax is computed online in-kernel.
#   loss_row = C + sum_j (-w_j) z_j + W * logsumexp_j(z_j),   W = confidence + (V-2)*smooth
# ----------------------------------------------------------------------------------------------
def _ls_logits_kernel(z_ref, tgt_ref, out_ref, acc_ref, m_ref, s_ref, *,
                      n_rows, n_cols, padding_idx, neg_conf, neg_smooth, sum_w, smooth_is_zero):
    ni = pl.program_id(0)
    vi = pl.program_id(1)
    nv = pl.num_programs(1)

    @pl.when(vi == 0)
    def _():
        acc_ref[...] = jnp.zeros_like(acc_ref)
        m_ref[...] = jnp.full_like(m_ref, _NEG_BIG)
        s_ref[...] = jnp.zeros_like(s_ref)

    z = z_ref[...].astype(jnp.float32)          # (TN, TV) raw logits
    tn, tv = z.shape
    tgt = tgt_ref[...]                          # (TN, 1) int32

    v_off = vi * tv
    tgt_local = tgt - v_off
    pad_local = padding_idx - v_off
    cols_left = n_cols - v_off

    local_col = jax.lax.broadcasted_iota(jnp.int32, (tn, tv), 1)
    row_id = jax.lax.broadcasted_iota(jnp.int32, (tn, 1), 0) + ni * tn
    row_ok = jnp.logical_and(row_id < n_rows, tgt != padding_idx)     # (TN, 1)
    col_ok = local_col < cols_left                                    # (TN, TV)

    # ---- online logsumexp over the (valid) vocab, per row (flash-attention style) ----
    z_m = jnp.where(col_ok, z, jnp.float32(_NEG_BIG))
    m_new = jnp.maximum(m_ref[...], jnp.max(z_m, axis=1, keepdims=True))
    alpha = jnp.exp(m_ref[...] - m_new)
    p = jnp.exp(z_m - m_new)                                          # EUP; masked lanes -> 0
    s_ref[...] = s_ref[...] * alpha + jnp.sum(p, axis=1, keepdims=True)
    m_ref[...] = m_new

    # ---- running weighted raw-logit sum:  acc += sum_j (-w_j) * z_j ----
    is_tgt = local_col == tgt_local
    keep = jnp.logical_and(row_ok, col_ok)
    keep = jnp.logical_and(keep, local_col != pad_local)
    if smooth_is_zero:
        keep = jnp.logical_and(keep, is_tgt)
    negw = jnp.where(is_tgt, jnp.float32(neg_conf), jnp.float32(neg_smooth))
    terms = jnp.where(keep, z * negw, jnp.float32(0.0))
    acc_ref[...] += _tree_add_slabs(terms)

    # ---- finalize: spread W*lse uniformly over the 128 lanes (output stays lane-dense) ----
    @pl.when(vi == nv - 1)
    def _():
        lse = m_ref[...] + jnp.log(s_ref[...])                        # (TN, 1)
        extra = jnp.float32(sum_w / 128.0) * lse
        out_ref[...] = jnp.where(row_ok, acc_ref[...] + extra, jnp.float32(0.0))


def label_smoothing_from_logits(logits, target, *, size, padding_idx, smoothing,
                                tile_n=256, tile_v=4096):
    """Fused log_softmax + label-smoothed KLDiv loss reading raw logits from HBM exactly once."""
    assert size > 2, "label smoothing requires size > 2 (divides by size - 2)"
    N, V = logits.shape
    assert V == size

    confidence, smooth_val, row_const_c = _smoothing_constants(size, smoothing)
    sum_w = confidence + (size - 2) * smooth_val       # total smoothed mass per non-pad row
    tgt = target.reshape(N, 1).astype(jnp.int32)

    tile_n, tile_v = _choose_tiles(N, V, tile_n, tile_v, logits.dtype)
    grid = (_cdiv(N, tile_n), _cdiv(V, tile_v))
    Np = grid[0] * tile_n

    kernel = functools.partial(
        _ls_logits_kernel,
        n_rows=N, n_cols=V, padding_idx=padding_idx,
        neg_conf=-confidence, neg_smooth=-smooth_val, sum_w=sum_w,
        smooth_is_zero=(smooth_val == 0.0))

    itemsize = jnp.dtype(logits.dtype).itemsize
    partials = pl.pallas_call(
        kernel,
        out_shape=jax.ShapeDtypeStruct((Np, 128), jnp.float32),
        grid_spec=pltpu.PrefetchScalarGridSpec(
            num_scalar_prefetch=0,
            grid=grid,
            in_specs=[
                pl.BlockSpec((tile_n, tile_v), lambda i, j: (i, j)),
                pl.BlockSpec((tile_n, 1), lambda i, j: (i, 0)),
            ],
            out_specs=pl.BlockSpec((tile_n, 128), lambda i, j: (i, 0)),
            scratch_shapes=[
                pltpu.VMEM((tile_n, 128), jnp.float32),   # sum_j (-w) z
                pltpu.VMEM((tile_n, 1), jnp.float32),     # running row max
                pltpu.VMEM((tile_n, 1), jnp.float32),     # running sum exp
            ],
        ),
        compiler_params=pltpu.CompilerParams(
            dimension_semantics=("parallel", "arbitrary"),
            vmem_limit_bytes=_vmem_limit(tile_n * tile_v * itemsize)),
        cost_estimate=pl.CostEstimate(
            flops=12 * N * V, transcendentals=N * V,
            bytes_accessed=N * V * itemsize + N * 4 + Np * 128 * 4),
    )(logits, tgt)

    nonpad = jnp.sum((target != padding_idx).astype(jnp.float32))
    return jnp.sum(partials) + jnp.float32(row_const_c) * nonpad


def _reference(x, target, *, size, padding_idx, smoothing):
    """Direct translation of the PyTorch LabelSmoothing forward (sum-reduced KLDivLoss)."""
    N, V = x.shape
    confidence = 1.0 - smoothing
    col = jnp.arange(V)[None, :]
    tgt = target.reshape(N, 1)
    td = jnp.where(col == tgt, confidence, smoothing / (size - 2)).astype(jnp.float32)
    td = jnp.where(col == padding_idx, 0.0, td)
    td = jnp.where(tgt == padding_idx, 0.0, td)
    safe_log = jnp.log(jnp.where(td > 0, td, 1.0))
    return jnp.sum(jnp.where(td > 0, td * (safe_log - x.astype(jnp.float32)), 0.0))


if __name__ == "__main__":
    padding_idx = 0
    smoothing = 0.1

    # Case 1: log-prob input, small tiles -> grid (3, 4): exercises parallel-N x arbitrary-V,
    # accumulator init/finalize, and the host-side C * count_nonpad term.
    size, N = 512, 48
    k1, k2 = jax.random.split(jax.random.PRNGKey(0))
    logits = jax.random.normal(k1, (N, size), dtype=jnp.float32)
    x = jax.nn.log_softmax(logits, axis=-1)                 # KLDivLoss expects log-probabilities
    target = jax.random.randint(k2, (N,), 0, size, dtype=jnp.int32)
    target = target.at[3].set(padding_idx).at[17].set(padding_idx)   # include padded positions

    loss = jax.block_until_ready(
        label_smoothing_loss(x, target, size=size, padding_idx=padding_idx,
                             smoothing=smoothing, tile_n=16, tile_v=128))
    ref = _reference(x, target, size=size, padding_idx=padding_idx, smoothing=smoothing)
    assert jnp.allclose(loss, ref, rtol=1e-5, atol=1e-3), (loss, ref)

    # Case 2: ragged shapes (N=10, V=70), default tiles -> in-kernel edge masking, no jnp.pad of x.
    N2, size2 = 10, 70
    logits2 = jax.random.normal(jax.random.PRNGKey(1), (N2, size2), dtype=jnp.float32)
    x2 = jax.nn.log_softmax(logits2, axis=-1)
    t2 = jax.random.randint(jax.random.PRNGKey(2), (N2,), 0, size2, dtype=jnp.int32)
    t2 = t2.at[0].set(padding_idx)
    loss2 = jax.block_until_ready(
        label_smoothing_loss(x2, t2, size=size2, padding_idx=padding_idx, smoothing=smoothing))
    ref2 = _reference(x2, t2, size=size2, padding_idx=padding_idx, smoothing=smoothing)
    assert jnp.allclose(loss2, ref2, rtol=1e-5, atol=1e-3), (loss2, ref2)

    # Case 3: bf16 log-probs (half the HBM read); f32 accumulation happens in-kernel.
    x_bf16 = x.astype(jnp.bfloat16)
    loss3 = jax.block_until_ready(
        label_smoothing_loss(x_bf16, target, size=size, padding_idx=padding_idx,
                             smoothing=smoothing))
    ref3 = _reference(x_bf16.astype(jnp.float32), target, size=size,
                      padding_idx=padding_idx, smoothing=smoothing)
    assert jnp.allclose(loss3, ref3, rtol=1e-5, atol=1e-3), (loss3, ref3)

    # Case 4: fused log_softmax + label smoothing straight from raw logits.
    loss4 = jax.block_until_ready(
        label_smoothing_from_logits(logits, target, size=size, padding_idx=padding_idx,
                                    smoothing=smoothing, tile_n=16, tile_v=128))
    assert jnp.allclose(loss4, ref, rtol=1e-4, atol=1e-2), (loss4, ref)

    # Case 4b: fused path on the ragged shapes.
    loss5 = jax.block_until_ready(
        label_smoothing_from_logits(logits2, t2, size=size2, padding_idx=padding_idx,
                                    smoothing=smoothing))
    assert jnp.allclose(loss5, ref2, rtol=1e-4, atol=1e-2), (loss5, ref2)

    print("KERNEL_OK")
</pallas_src>

<mosaic_0001>
module attributes {stable_mosaic.version = 11 : i64} {
  func.func @_ls_logprob_kernel(%arg0: i32, %arg1: i32, %arg2: memref<16x128xf32, #tpu.memory_space<vmem>>, %arg3: memref<16x1xi32, #tpu.memory_space<vmem>>, %arg4: memref<16x128xf32, #tpu.memory_space<vmem>>, %arg5: memref<16x128xf32, #tpu.memory_space<vmem>>) attributes {dimension_semantics = [#tpu.dimension_semantics<parallel>, #tpu.dimension_semantics<arbitrary>], iteration_bounds = array<i64: 3, 4>, scalar_prefetch = 0 : i64, scratch_operands = 1 : i64, tpu.core_type = #tpu.core_type<tc>, window_params = [{transform_indices = @transform_0, window_bounds = array<i64: 16, 128>}, {transform_indices = @transform_1, window_bounds = array<i64: 16, 1>}, {transform_indices = @transform_2, window_bounds = array<i64: 16, 128>}]} {
    %c0_i32 = arith.constant 0 : i32
    %0 = arith.cmpi eq, %arg1, %c0_i32 : i32
    %1 = arith.extui %0 : i1 to i32
    %c0_i32_0 = arith.constant 0 : i32
    %2 = arith.cmpi ne, %1, %c0_i32_0 : i32
    scf.if %2 {
      %cst_13 = arith.constant 0.000000e+00 : f32
      %41 = vector.broadcast %cst_13 : f32 to vector<16x128xf32>
      %c0_14 = arith.constant 0 : index
      %c0_15 = arith.constant 0 : index
      %42 = vector.load %arg5[%c0_14, %c0_15] : memref<16x128xf32, #tpu.memory_space<vmem>>, vector<16x128xf32>
      tpu.vector_store %arg5[%c0_14, %c0_15], %41 {strides = array<i32>} : memref<16x128xf32, #tpu.memory_space<vmem>>, vector<16x128xf32>,
    } else {
    }
    %c0 = arith.constant 0 : index
    %c0_1 = arith.constant 0 : index
    %3 = vector.load %arg2[%c0, %c0_1] : memref<16x128xf32, #tpu.memory_space<vmem>>, vector<16x128xf32>
    %c0_2 = arith.constant 0 : index
    %c0_3 = arith.constant 0 : index
    %4 = vector.load %arg3[%c0_2, %c0_3] : memref<16x1xi32, #tpu.memory_space<vmem>>, vector<16x1xi32>
    %c128_i32 = arith.constant 128 : i32
    %5 = arith.muli %arg1, %c128_i32 : i32
    %6 = vector.broadcast %5 : i32 to vector<16x1xi32>
    %7 = arith.subi %4, %6 : vector<16x1xi32>
    %c0_i32_4 = arith.constant 0 : i32
    %8 = arith.subi %c0_i32_4, %5 : i32
    %c512_i32 = arith.constant 512 : i32
    %9 = arith.subi %c512_i32, %5 : i32
    %10 = tpu.iota {dimensions = array<i32: 1>} : vector<16x128xi32>
    %11 = tpu.iota {dimensions = array<i32: 0>} : vector<16x1xi32>
    %c16_i32 = arith.constant 16 : i32
    %12 = arith.muli %arg0, %c16_i32 : i32
    %13 = vector.broadcast %12 : i32 to vector<16x1xi32>
    %14 = arith.addi %11, %13 : vector<16x1xi32>
    %c48_i32 = arith.constant 48 : i32
    %15 = vector.broadcast %c48_i32 : i32 to vector<16x1xi32>
    %16 = arith.cmpi slt, %14, %15 : vector<16x1xi32>
    %c0_i32_5 = arith.constant 0 : i32
    %17 = vector.broadcast %c0_i32_5 : i32 to vector<16x1xi32>
    %18 = arith.cmpi ne, %4, %17 : vector<16x1xi32>
    %19 = arith.andi %16, %18 : vector<16x1xi1>
    %20 = vector.broadcast %7 : vector<16x1xi32> to vector<16x128xi32>
    %21 = arith.cmpi eq, %10, %20 : vector<16x128xi32>
    %22 = vector.broadcast %9 : i32 to vector<16x128xi32>
    %23 = arith.cmpi slt, %10, %22 : vector<16x128xi32>
    %24 = vector.broadcast %19 : vector<16x1xi1> to vector<16x128xi1>
    %25 = arith.andi %24, %23 : vector<16x128xi1>
    %26 = vector.broadcast %8 : i32 to vector<16x128xi32>
    %27 = arith.cmpi ne, %10, %26 : vector<16x128xi32>
    %28 = arith.andi %25, %27 : vector<16x128xi1>
    %cst = arith.constant -0.899999976 : f32
    %cst_6 = arith.constant -1.96078428E-4 : f32
    %29 = vector.broadcast %cst : f32 to vector<16x128xf32>
    %30 = vector.broadcast %cst_6 : f32 to vector<16x128xf32>
    %31 = arith.select %21, %29, %30 : vector<16x128xi1>, vector<16x128xf32>
    %32 = arith.mulf %3, %31 : vector<16x128xf32>
    %cst_7 = arith.constant 0.000000e+00 : f32
    %33 = vector.broadcast %cst_7 : f32 to vector<16x128xf32>
    %34 = arith.select %28, %32, %33 : vector<16x128xi1>, vector<16x128xf32>
    %c0_8 = arith.constant 0 : index
    %c0_9 = arith.constant 0 : index
    %35 = vector.load %arg5[%c0_8, %c0_9] : memref<16x128xf32, #tpu.memory_space<vmem>>, vector<16x128xf32>
    %36 = arith.addf %35, %34 : vector<16x128xf32>
    %c0_10 = arith.constant 0 : index
    %c0_11 = arith.constant 0 : index
    %37 = vector.load %arg5[%c0_10, %c0_11] : memref<16x128xf32, #tpu.memory_space<vmem>>, vector<16x128xf32>
    tpu.vector_store %arg5[%c0_10, %c0_11], %36 {strides = array<i32>} : memref<16x128xf32, #tpu.memory_space<vmem>>, vector<16x128xf32>,
    %c3_i32 = arith.constant 3 : i32
    %38 = arith.cmpi eq, %arg1, %c3_i32 : i32
    %39 = arith.extui %38 : i1 to i32
    %c0_i32_12 = arith.constant 0 : i32
    %40 = arith.cmpi ne, %39, %c0_i32_12 : i32
    scf.if %40 {
      %c0_13 = arith.constant 0 : index
      %c0_14 = arith.constant 0 : index
      %41 = vector.load %arg5[%c0_13, %c0_14] : memref<16x128xf32, #tpu.memory_space<vmem>>, vector<16x128xf32>
      %c0_15 = arith.constant 0 : index
      %c0_16 = arith.constant 0 : index
      %42 = vector.load %arg4[%c0_15, %c0_16] : memref<16x128xf32, #tpu.memory_space<vmem>>, vector<16x128xf32>
      tpu.vector_store %arg4[%c0_15, %c0_16], %41 {strides = array<i32>} : memref<16x128xf32, #tpu.memory_space<vmem>>, vector<16x128xf32>,
    } else {
    }
    return
  }
  func.func @transform_0(%arg0: i32, %arg1: i32) -> (i32, i32) {
    %c0_i32 = arith.constant 0 : i32
    return %arg0, %arg1 : i32, i32
  }
  func.func @transform_1(%arg0: i32, %arg1: i32) -> (i32, i32) {
    %c0_i32 = arith.constant 0 : i32
    %c0_i32_0 = arith.constant 0 : i32
    return %arg0, %c0_i32 : i32, i32
  }
  func.func @transform_2(%arg0: i32, %arg1: i32) -> (i32, i32) {
    %c0_i32 = arith.constant 0 : i32
    %c0_i32_0 = arith.constant 0 : i32
    return %arg0, %c0_i32 : i32, i32
  }
}

</mosaic_0001>

<bundles_post_ra>
// kernel: tpu_custom_call.1
= control target key start
LH: loop header
LB: loop body
LE: loop exit
PB: predicated region body
PF: predicated region fallthrough
CT: control target
= control target key end

     0   :  { %7 = vsyncpa [#allocation4], 0  ;;  %s921_s0 = inlined_call_operand.hbm [shape: f32[48,512], index: 0, kind: input, shape index: {}]   ;;  %s922_s1 = inlined_call_operand.vmem [shape: s32[48,1], index: 1, kind: input, shape index: {}]   ;;  %s923_s2 = inlined_call_operand.hbm [shape: f32[48,128], index: 2, kind: output, shape index: {}]  }
   0x1   :  { %9 = vsyncpa [#allocation4 + $0x1], 0 }
   0x2   :  { %10 = vsyncpa [#allocation5], 0 }
   0x3   :  { %12 = vsyncpa [#allocation5 + $0x1], 0  ;;  %s702_s9 = smov 0   ;;  %s704_s10 = smov 0  }
   0x4   :  { %s706_s11 = smov 0   ;;  %s708_s12 = smov 0  }
   0x5   :  { %s710_s13 = smov 0   ;;  %s712_s14 = smov 0  }
   0x6   :  { %s714_s15 = smov 0   ;;  %s716_s16 = smov 0  }
   0x7   :  { %s718_s17 = smov 0   ;;  %s720_s18 = smov 0  }
   0x8   :  { %s722_s19 = smov 0  }
   0x9 LB: > { %s391_s20 = sadd.s32 4294967295, %s675_s19   ;;  %s392_s21 = sadd.s32 4294967294, %s675_s19   ;;  %s675_s19 = sphi %s722_s19, %s18_s19   ;;  %s671_s18 = sphi %s720_s18, %s946_s18   ;;  %s667_s17 = sphi %s718_s17, %s945_s17   ;;  %s663_s16 = sphi %s716_s16, %s944_s16   ;;  %s659_s15 = sphi %s714_s15, %s943_s15   ;;  %s655_s14 = sphi %s712_s14, %s942_s14   ;;  %s651_s13 = sphi %s710_s13, %s941_s13   ;;  %s647_s12 = sphi %s708_s12, %s940_s12   ;;  %s643_s11 = sphi %s706_s11, %s939_s11   ;;  %s639_s10 = sphi %s704_s10, %s938_s10   ;;  %s635_s9 = sphi %s702_s9, %s937_s9  }
   0xa   : > { %s27_s22 = sadd.s32 1, %s667_s17  ;;  %s30_s23 = sadd.s32 1, %s671_s18 }
   0xb   : > { %p28_p0 = scmp.ge.s32.totalorder %s27_s22, 4  ;;  %s39_s24 = sadd.s32 1, %s655_s14 }
   0xc   : > { %p46_p1 = scmp.ne.s32.totalorder %s655_s14, %s651_s13  ;;  %p47_p2 = scmp.eq.s32.totalorder %s675_s19, 0 }
   0xd   : > { %s948_s22 = smov (%p28_p0, %s27_s22), 0  ;;  %s950_s23 = smov (!%p28_p0, %s30_s23), %s671_s18 }
   0xe   : > { %926 = sst [smem:[#allocation9_spill]] %s948_s22  ;;  %s35_s25 = ssub.s32 %s667_s17, %s948_s22 }
   0xf   : > { %p768_p3 = por %p47_p2, %p46_p1  ;;  %p32_p4 = scmp.ge.s32.totalorder %s950_s23, 3 }
  0x10   : > { %p52_p5 = scmp.ne.s32.totalorder %s651_s13, %s647_s12  ;;  %p53_p6 = scmp.eq.s32.totalorder %s391_s20, 0 }
  0x11   : > { %s91_s27 = sadd.s32 1, %s643_s11  ;;  %s952_s23 = smov (%p32_p4, %s950_s23), 0 }
  0x12   : > { %928 = sst [smem:[#allocation10_spill]] %s952_s23  ;;  %p776_p7 = por %p53_p6, %p52_p5 }
  0x13   : > { %p101_p8 = scmp.ne.s32.totalorder %s643_s11, %s639_s10  ;;  %s34_s29 = ssub.s32 %s671_s18, %s952_s23 }
  0x14   : > { %p102_p9 = scmp.eq.s32.totalorder %s391_s20, 11  ;;  %s36_s30 = sor.u32 %s35_s25, %s34_s29 }
  0x15   : > { %p89_p10 = scmp.eq.s32.totalorder %s34_s29, 0  ;;  %p37_p11 = scmp.eq.s32.totalorder %s36_s30, 0 }
  0x16   : > { %p784_p12 = por %p102_p9, %p101_p8  ;;  %p107_p13 = scmp.ne.s32.totalorder %s639_s10, %s635_s9 }
  0x17   : > { %s789_s4 = scalar_select %p89_p10, %s643_s11, %s91_s27  }
  0x18   : > { %s792_s5 = scalar_select %p37_p11, %s655_s14, %s39_s24  }
  0x19   : > { %p108_p0 = scmp.eq.s32.totalorder %s392_s21, 11  ;;  %p427_p1 = scmp.lt.s32.totalorder %s675_s19, 12 }
  0x1a   : > { %931 = sst [smem:[#allocation11_spill]] %s792_s5  ;;  %s128_s7 = sand.u32 1, %s655_s14  }
  0x1b   : > { %p797_p2 = por %p108_p0, %p107_p13  ;;  %s395_s8 = sshll.u32 %s128_s7, 4 }
  0x1c   : > { %s413_s12 = sshll.u32 %s671_s18, 3  ;;  %s132_s25 = scalar_lea.vmem [#allocation3], %s395_s8 }
  0x1d   : > { %s138_s20 = sadd.s32 %s667_s17, %s413_s12  ;;  %s141_s29 = sshll.u32 %s132_s25, 4  ;;  %s142_s29 = int_to_ptr.vmem [resolvable:$true] %s141_s29 }
  0x1e   : > { %s398_s30 = sshll.u32 %s138_s20, 7  ;;  %p809_p4 = pnand %p427_p1, %p768_p3 }
  0x1f   : > { %s140_s24 = scalar_lea.hbm %s921_s0, %s398_s30  ;;  %s129_s22 = scalar_lea.sflag [#allocation4], %s128_s7 }
  0x20   : > { %p529_p5 = pneg %p809_p4  ;;  %s540_s5 = scalar_lea.vmem %s142_s29, 256 }
  0x21   : > { %p541_p6 = scmp.ne.s32.totalorder %s142_s29, %s540_s5  ;;  %s677_s8 = smov [#allocation3]  }
  0x22   : > { %s545_s12 = sshll.u32 %s677_s8, 4  ;;  %s546_s12 = int_to_ptr.vmem [resolvable:$false] %s545_s12 }
  0x23   : > { %p543_p8 = pnand %p541_p6, %p529_p5  ;;  %s547_s20 = scalar_lea.vmem %s546_s12, 512 }
  0x24   : > { %p548_p10 = scmp.lt.s32.totalorder %s142_s29, %s546_s12  ;;  %p549_p11 = scmp.lt.s32.totalorder %s547_s20, %s540_s5 }
  0x25   : > { %p544_p9 = pneg %p543_p8 }
  0x26   : > { %p550_p13 = por %p549_p11, %p548_p10 }
  0x28   : > { %p551_p0 = pnand %p550_p13, %p544_p9 }
  0x2a   : > { %554 = shalt.err (!%p551_p0)
}
  0x2b   : > { %s678_s23 = smov 512   ;;  %s679_s26 = smov 128  }
  0x2c   : > { %s680_s7 = smov 8   ;;  %p399_p3 = scmp.ge.s32.totalorder %s675_s19, 1 }
  0x2d   : > { %422 = dma.hbm_to_vmem [thread:$0]  (!%p809_p4), %s140_s24, 256, %s142_s29, %s129_s22, %s678_s23, %s679_s26, %s680_s7  }
  0x2e   : > { %p158_p1 = scmp.lt.s32.totalorder %s675_s19, 13 }
  0x30   : > { %p159_p5 = pnand %p399_p3, %p158_p1 }
  0x31   : > { %s164_s25 = sand.u32 (!%p159_p5), 1, %s651_s13  }
  0x32   : > { %162 = sbr.rel (%p159_p5) target bundleno = 243 (0xf3), region = 28  ;;  %s820_s30 = sshll.u32 (!%p159_p5), %s164_s25, 4 }
  0x33   : > { %s165_s5 = scalar_lea.sflag (!%p159_p5), [#allocation4], %s164_s25  ;;  %s168_s27 = scalar_lea.vmem (!%p159_p5), [#allocation3], %s820_s30 }
  0x37   : > { %626 = dma.done.wait (%p776_p7), %s165_s5, 256  }
  0x38   : > { %628 = vsyncadd (%p776_p7), %s165_s5, 4294967040  ;;  %s191_s22 = sand.u32 1, %s639_s10   ;;  %s402_s29 = sshll.u32 %s663_s16, 1 }
  0x39   : > { %s401_s24 = sshll.u32 %s191_s22, 4  ;;  %p196_p4 = scmp.lt.s32.totalorder %s402_s29, 5 }
  0x3a   : > { %s834_s23 = scalar_lea.vmem [#allocation6], %s401_s24  ;;  %p404_p6 = scmp.ne.s32.totalorder %s659_s15, 0 }
  0x3b   : > { %s954_s29 = smov (!%p196_p4, %s402_s29), 5 }
  0x3c   : > { %s403_s21 = sshll.u32 %s954_s29, 3  ;;  %205 = sbr.rel (%p404_p6) target bundleno = 67 (0x43), region = 36 }
  0x3d   : > { %s199_s20 = scalar_lea.vmem %s922_s1, %s403_s21 }
  0x41   : > { %v681_v0 = vmov 0.0  }
  0x42   : > { %206 = vst [vmem:[#allocation2] sm:$0xff] %v681_v0  ;;  %207 = vst [vmem:[#allocation2 + $0x8] sm:$0xff] %v681_v0 }
  0x43 PF: > { %v210_v1 = vld [vmem:[%s199_s20] sm:$0xff]  ;;  %s405_s28 = sshll.u32 %s659_s15, 7  ;;  %v218_v2 = vlaneseq  ;;  %s406_s26 = sshll.u32 %s663_s16, 4  ;;  %v682_v3 = vmov 0   ;;  %v211_v4 = vld [vmem:[%s199_s20 + $0x8] sm:$0xff] }
  0x44   : > { %525 = vset.pattern.permute.xlu0 %v682_v3  ;;  %v213_v5 = vstv %s405_s28  ;;  %526 = vset.pattern.permute.xlu1 %v682_v3  ;;  %v224_v6 = vstv %s406_s26  ;;  %vm229_vm0 = vcmp.ne.s32.totalorder %v210_v1, 0  ;;  %s217_s7 = ssub.s32 512, %s405_s28  ;;  %s216_s25 = ssub.s32 0, %s405_s28  ;;  %vm230_vm3 = vcmp.ne.s32.totalorder %v211_v4, 0  ;;  %v208_v19 = vld [vmem:[%s168_s27] sm:$0xff]  ;;  %v209_v26 = vld [vmem:[%s168_s27 + $0x8] sm:$0xff] }
  0x45   : > { %v214_v7 = vsub.s32 %v210_v1, %v213_v5  ;;  %v221_v8 = vshrl.u32 %v218_v2, 7  ;;  %v219_v9 = vand.u32 127, %v218_v2  ;;  %v215_v10 = vsub.s32 %v211_v4, %v213_v5  ;;  %p407_p7 = scmp.ne.s32.totalorder %s659_s15, 3 }
  0x46   : > { %v241_v13 = vstv %s217_s7  ;;  %v255_v14 = vstv %s216_s25  ;;  %v683_v20 = vmov -0.00019607843  }
  0x47   : > { %234 = vperm.xlu0 %525, %v214_v7   ;;  %v225_v11 = vadd.s32 %v224_v6, %v221_v8  ;;  %v222_v12 = vadd.s32 8, %v221_v8  ;;  %vm242_vm1 = vcmp.lt.s32.totalorder %v219_v9, %v241_v13  ;;  %vm256_vm4 = vcmp.ne.s32.totalorder %v219_v9, %v255_v14 }
  0x49   : > { %vm227_vm2 = vcmp.lt.s32.totalorder %v225_v11, 48  ;;  %v226_v15 = vadd.s32 %v224_v6, %v222_v12  ;;  %v265_v25 = vld [vmem:[#allocation2] sm:$0xff]  ;;  %v266_v32 = vld [vmem:[#allocation2 + $0x8] sm:$0xff] }
  0x4a   : > { %vm231_vm5 = vmand %vm227_vm2, %vm229_vm0 }
  0x4b   : > { %237 = vperm.xlu0 %525, %v215_v10   ;;  %v243_v16 = vsel %vm231_vm5, 1, %v682_v3  ;;  %vm228_vm6 = vcmp.lt.s32.totalorder %v226_v15, 48 }
  0x4c   : > { %246 = vperm.xlu1 %526, %v243_v16   ;;  %vm232_vm7 = vmand %vm228_vm6, %vm230_vm3 }
  0x4d   : > { %v244_v17 = vsel %vm232_vm7, 1, %v682_v3 }
  0x50   : > { %249 = vperm.xlu1 %526, %v244_v17  }
  0xc2   : > { %v235_v18 = vpop.permute.xlu0 %234 }
  0xc3   : > { %vm239_vm8 = vcmp.eq.s32.totalorder %v219_v9, %v235_v18 }
  0xc4   : > { %v259_v21 = vsel %vm239_vm8, -0.9, %v683_v20 }
  0xc5   : > { %v261_v23 = vmul.f32 %v259_v21, %v208_v19 }
  0xc6   : > { %v238_v22 = vpop.permute.xlu0 %237 }
  0xc7   : > { %vm240_vm9 = vcmp.eq.s32.totalorder %v219_v9, %v238_v22  ;;  %v247_v24 = vpop.permute.xlu1 %246 }
  0xc8   : > { %vm251_vm10 = vcmp.eq.s32.totalorder %v247_v24, 1  ;;  %v260_v27 = vsel %vm240_vm9, -0.9, %v683_v20 }
  0xc9   : > { %vm253_vm11 = vmand %vm251_vm10, %vm242_vm1  ;;  %v262_v31 = vmul.f32 %v260_v27, %v209_v26 }
  0xca   : > { %vm257_vm12 = vmand %vm253_vm11, %vm256_vm4 }
  0xcb   : > { %v263_v28 = vsel %vm257_vm12, %v261_v23, 0.0  ;;  %v250_v29 = vpop.permute.xlu1 %249 }
  0xcc   : > { %v267_v30 = vadd.f32 %v265_v25, %v263_v28  ;;  %vm252_vm13 = vcmp.eq.s32.totalorder %v250_v29, 1 }
  0xcd   : > { %vm254_vm14 = vmand %vm252_vm13, %vm242_vm1 }
  0xce   : > { %269 = vst [vmem:[#allocation2] sm:$0xff] %v267_v30  ;;  %vm258_vm15 = vmand %vm254_vm14, %vm256_vm4  ;;  %274 = sbr.rel (%p407_p7) target bundleno = 219 (0xdb), region = 40 }
  0xcf   : > { %v264_v33 = vsel %vm258_vm15, %v262_v31, 0.0 }
  0xd0   : > { %v268_v34 = vadd.f32 %v266_v32, %v264_v33 }
  0xd2   : > { %270 = vst [vmem:[#allocation2 + $0x8] sm:$0xff] %v268_v34 }
  0xd5   : > { %v275_v35 = vld [vmem:[#allocation2] sm:$0xff] }
  0xd6   : > { %277 = vst [vmem:[%s834_s23] sm:$0xff] %v275_v35 }
  0xd9   : > { %v276_v36 = vld [vmem:[#allocation2 + $0x8] sm:$0xff] }
  0xda   : > { %278 = vst [vmem:[%s834_s23 + $0x8] sm:$0xff] %v276_v36 }
  0xdb PF: > { %s414_s30 = sshll.u32 %s663_s16, 8  ;;  %s293_s24 = sshll.u32 %s834_s23, 4  ;;  %s857_s24 = int_to_ptr.vmem [resolvable:$true] %s293_s24 }
  0xdc   : > { %s854_s29 = scalar_lea.hbm %s923_s2, %s414_s30  ;;  %s861_s15 = scalar_lea.sflag [#allocation5], %s191_s22 }
  0xdd   : > { %s555_s21 = scalar_lea.vmem %s857_s24, 256  ;;  %s684_s16 = smov [#allocation6]  }
  0xde   : > { %p556_p8 = scmp.ne.s32.totalorder %s857_s24, %s555_s21  ;;  %s559_s8 = sshll.u32 %s684_s16, 4  ;;  %s560_s8 = int_to_ptr.vmem [resolvable:$false] %s559_s8 }
  0xdf   : > { %s561_s12 = scalar_lea.vmem %s560_s8, 512  ;;  %p562_p11 = scmp.lt.s32.totalorder %s857_s24, %s560_s8 }
  0xe0   : > { %p557_p9 = pnand %p556_p8, %p784_p12  ;;  %p563_p13 = scmp.lt.s32.totalorder %s561_s12, %s555_s21 }
  0xe2   : > { %p558_p10 = pneg %p557_p9  ;;  %p564_p0 = por %p563_p13, %p562_p11 }
  0xe4   : > { %p565_p3 = pnand %p564_p0, %p558_p10 }
  0xe6   : > { %568 = shalt.err (!%p565_p3)
}
  0xe7   : > { %s569_s22 = scalar_lea.hbm %s854_s29, 256  ;;  %s573_s28 = scalar_lea.hbm %s923_s2, 768 }
  0xe8   : > { %p570_p1 = scmp.ne.s32.totalorder %s854_s29, %s569_s22  ;;  %p574_p6 = scmp.lt.s32.totalorder %s854_s29, %s923_s2 }
  0xe9   : > { %p575_p7 = scmp.lt.s32.totalorder %s573_s28, %s569_s22 }
  0xea   : > { %p571_p5 = pnand %p570_p1, %p784_p12 }
  0xeb   : > { %p576_p8 = por %p575_p7, %p574_p6 }
  0xec   : > { %p572_p4 = pneg %p571_p5 }
  0xee   : > { %p577_p9 = pnand %p576_p8, %p572_p4 }
  0xf0   : > { %580 = shalt.err (!%p577_p9)
}
  0xf1   : > { %s685_s25 = smov 128   ;;  %s686_s30 = smov 8  }
  0xf2   : > { %417 = dma.vmem_to_hbm [thread:$0]  (%p784_p12), %s857_s24, 256, %s854_s29, %s861_s15, %s685_s25, %s685_s25, %s686_s30  }
  0xf3 PF: > { %p428_p10 = scmp.ge.s32.totalorder %s675_s19, 2  ;;  %s308_s5 = sand.u32 1, %s635_s9  }
  0xf4   : > { %s309_s27 = scalar_lea.sflag [#allocation5], %s308_s5 }
  0xf5   : > { %p424_p11 = pnand %p428_p10, %p797_p2 }
  0xf7   : > { %p425_p13 = pneg %p424_p11 }
  0xf9   : > { %630 = dma.done.wait (%p425_p13), %s309_s27, 256  }
  0xfa   : > { %632 = vsyncadd (%p425_p13), %s309_s27, 4294967040  ;;  %s18_s19 = sadd.s32 1, %s675_s19   ;;  %s934_s3 = sld [smem:[#allocation11_spill]] }
  0xfb   : > { %p15_p0 = scmp.ge.s32.totalorder %s18_s19, 14   ;;  %s935_s29 = sld [smem:[#allocation9_spill]] }
  0xfc   : > { %s936_s24 = sld [smem:[#allocation10_spill]]  ;;  %s937_s9 = smov %s639_s10 }
  0xfd   : > { %s938_s10 = smov %s643_s11  ;;  %s939_s11 = smov %s789_s4 }
  0xfe   : > { %s940_s12 = smov %s651_s13  ;;  %s941_s13 = smov %s655_s14 }
  0xff   : > { %s943_s15 = smov %s667_s17  ;;  %s944_s16 = smov %s671_s18 }
 0x100   : > { %s942_s14 = smov %s934_s3  ;;  %17 = sbr.rel (!%p15_p0) target bundleno = 9 (0x9), region = 84 }
 0x101   : > { %s945_s17 = smov %s935_s29 }
 0x102   : > { %s946_s18 = smov %s936_s24 }
 0x105   :  { %314 = vsyncpa [#allocation4], 1 }
 0x106   :  { %316 = vsyncpa [#allocation4 + $0x1], 1 }
 0x107   :  { %317 = vsyncpa [#allocation5], 1 }
 0x108   :  { %319 = vsyncpa [#allocation5 + $0x1], 1 }

</bundles_post_ra>
